<compile_context>
chip_gen: v7x
topology: tpu7x:2x2x1
jax: 0.10.0
libtpu: 0.0.40
codegen_flags: <defaults>
</compile_context>

<pallas_src>
import math
import functools

import jax
import jax.numpy as jnp
from jax import lax
from jax.experimental import pallas as pl
from jax.experimental.pallas import tpu as pltpu

LN_EPS = 1e-5
NEG_INF = -1000000000.0  # matches the torch masked_fill constant


def _layernorm(x, g, b):
    mu = jnp.mean(x, axis=-1, keepdims=True)
    var = jnp.mean(jnp.square(x - mu), axis=-1, keepdims=True)
    return (x - mu) * lax.rsqrt(var + LN_EPS) * g + b


def _gelu_tanh(x):
    # tanh-approx GELU: single EUP tanh instead of a ~10-VALU-op erf polynomial
    # on the widest (S, 4D) activation.
    c = math.sqrt(2.0 / math.pi)
    return 0.5 * x * (1.0 + jnp.tanh(c * (x + 0.044715 * x * x * x)))


# ---------------------------------------------------------------------------
# Fused kernel: one batch element per grid step
# ---------------------------------------------------------------------------
def _fused_mab_kernel(x_ref, adj_ref,
                      wqkv_ref, bqkv_ref,
                      g1_ref, b1_ref,
                      wo_ref, bo_ref,
                      g2_ref, b2_ref,
                      w1_ref, bm1_ref,
                      w2_ref, bm2_ref,
                      o_ref, *, num_heads):
    H = num_heads

    x = x_ref[0].astype(jnp.float32)          # (S, D) residual, f32
    allowed = adj_ref[0] > 0.5                # bf16 mask compared directly

    # ---- LayerNorm1 (f32) ---------------------------------------------------
    nx = _layernorm(x, g1_ref[...], b1_ref[...])
    nx_bf = nx.astype(jnp.bfloat16)           # single bf16 cast, reused by all heads
    S, D = nx.shape

    # ---- per-head masked attention, fori_loop bounds live ranges ------------
    def head_body(h, proj):
        # 1/sqrt(head_dim) is pre-folded into the q weight/bias columns.
        q = jnp.dot(nx_bf, wqkv_ref[h],
                    preferred_element_type=jnp.float32) + bqkv_ref[h]
        k = jnp.dot(nx_bf, wqkv_ref[H + h],
                    preferred_element_type=jnp.float32) + bqkv_ref[H + h]
        v = jnp.dot(nx_bf, wqkv_ref[2 * H + h],
                    preferred_element_type=jnp.float32) + bqkv_ref[2 * H + h]

        # scores = q @ k^T (contract last dims, bf16 MXU operands, f32 acc)
        scores = lax.dot_general(
            q.astype(jnp.bfloat16), k.astype(jnp.bfloat16),
            (((1,), (1,)), ((), ())),
            preferred_element_type=jnp.float32)            # (S, S)
        scores = jnp.where(allowed, scores, NEG_INF)       # masked_fill(-1e9)

        m = jnp.max(scores, axis=-1, keepdims=True)
        e = jnp.exp(scores - m)                            # un-normalized probs
        inv_l = pl.reciprocal(jnp.sum(e, axis=-1, keepdims=True), approx=True)

        # Deferred normalization: e @ v first, scale the (S, Dh) result after.
        # dropout(attn_weights) is identity in eval mode.
        ao = jnp.dot(e.astype(jnp.bfloat16), v.astype(jnp.bfloat16),
                     preferred_element_type=jnp.float32)   # (S, Dh)
        ao = ao * inv_l

        # concat(heads) @ Wo  ==  sum_h head_h @ Wo[h]  (lane-dense (S, D) acc)
        contrib = jnp.dot(ao.astype(jnp.bfloat16), wo_ref[h],
                          preferred_element_type=jnp.float32)
        return proj + contrib

    proj = lax.fori_loop(0, H, head_body, jnp.zeros((S, D), jnp.float32))

    x1 = x + proj + bo_ref[...]                            # residual 1 (f32)

    # ---- LayerNorm2 + MLP(GELU) + residual 2 --------------------------------
    n2 = _layernorm(x1, g2_ref[...], b2_ref[...])
    hdn = jnp.dot(n2.astype(jnp.bfloat16), w1_ref[...],
                  preferred_element_type=jnp.float32) + bm1_ref[...]
    hdn = _gelu_tanh(hdn)
    mlp = jnp.dot(hdn.astype(jnp.bfloat16), w2_ref[...],
                  preferred_element_type=jnp.float32) + bm2_ref[...]
    o_ref[0] = (x1 + mlp).astype(o_ref.dtype)


# ---------------------------------------------------------------------------
# Wrapper
# ---------------------------------------------------------------------------
def _vmem_estimate_bytes(S, D):
    """Rough resident-VMEM estimate (weights double-buffered + live tensors)."""
    bf16, f32 = 2, 4
    weights = 2 * bf16 * (3 * D * D + D * D + 4 * D * D + 4 * D * D)  # qkv,wo,w1,w2
    io = 2 * f32 * (2 * S * D) + 2 * bf16 * S * S                     # x/out + mask
    live = f32 * (3 * S * D + 2 * S * S + 2 * S * 4 * D)              # nx/x1/proj, scores, hdn
    return weights + io + live


def masked_attention_block(x, adj_mask, params, num_heads):
    B, S, D = x.shape
    H = num_heads
    Dh = D // H
    scale = 1.0 / math.sqrt(Dh)

    # Pre-split weights per head in the wrapper (one-time, weight-sized ops),
    # cast to bf16 for the MXU:
    #   Q/K/V: (D, D) -> (H, D, Dh) ; biases: (1, D) -> (H, 1, Dh) (f32)
    #   out_proj: (D, D) -> (H, Dh, D)
    def split_w(w):  # columns per head
        return w.reshape(D, H, Dh).transpose(1, 0, 2)

    def split_b(b):
        return b.reshape(H, Dh)[:, None, :]

    wqkv_h = jnp.concatenate(
        [split_w(params["wq"] * scale), split_w(params["wk"]),
         split_w(params["wv"])], axis=0).astype(jnp.bfloat16)   # (3H, D, Dh) bf16
    bqkv_h = jnp.concatenate(
        [split_b(params["bq"] * scale), split_b(params["bk"]),
         split_b(params["bv"])], axis=0)                        # (3H, 1, Dh) f32
    wo_h = params["wo"].reshape(H, Dh, D).astype(jnp.bfloat16)  # (H, Dh, D) bf16
    w1_bf = params["w1"].astype(jnp.bfloat16)                   # (D, 4D) bf16
    w2_bf = params["w2"].astype(jnp.bfloat16)                   # (4D, D) bf16

    # bf16 0/1 mask: halves mask DMA traffic; compared directly in-kernel.
    adj_bf16 = adj_mask.astype(jnp.bfloat16)

    row = lambda b: (b, 0, 0)       # per-batch blocks
    vec2 = lambda b: (0, 0)         # grid-invariant 2-D params
    vec3 = lambda b: (0, 0, 0)      # grid-invariant 3-D params

    # Raise the scoped-VMEM limit only when the resident set needs it
    # (default scoped limits: 16 MiB v5e / 32 MiB v6e+v7x).
    est = _vmem_estimate_bytes(S, D)
    vmem_limit = None
    if est > 16 * 1024 * 1024:
        vmem_limit = min(int(est * 1.5), 100 * 1024 * 1024)

    kernel = functools.partial(_fused_mab_kernel, num_heads=H)
    return pl.pallas_call(
        kernel,
        out_shape=jax.ShapeDtypeStruct((B, S, D), x.dtype),
        grid=(B,),
        in_specs=[
            pl.BlockSpec((1, S, D), row),                              # x
            pl.BlockSpec((1, S, S), row),                              # adj mask
            pl.BlockSpec((3 * H, D, Dh), vec3),                        # qkv W (bf16)
            pl.BlockSpec((3 * H, 1, Dh), vec3),                        # qkv b (f32)
            pl.BlockSpec((1, D), vec2), pl.BlockSpec((1, D), vec2),    # ln1
            pl.BlockSpec((H, Dh, D), vec3), pl.BlockSpec((1, D), vec2),# out_proj
            pl.BlockSpec((1, D), vec2), pl.BlockSpec((1, D), vec2),    # ln2
            pl.BlockSpec((D, 4 * D), vec2), pl.BlockSpec((1, 4 * D), vec2),  # fc1
            pl.BlockSpec((4 * D, D), vec2), pl.BlockSpec((1, D), vec2),      # fc2
        ],
        out_specs=pl.BlockSpec((1, S, D), row),
        compiler_params=pltpu.CompilerParams(
            dimension_semantics=("parallel",),
            vmem_limit_bytes=vmem_limit),
    )(x, adj_bf16,
      wqkv_h, bqkv_h,
      params["ln1_g"], params["ln1_b"],
      wo_h, params["bo"],
      params["ln2_g"], params["ln2_b"],
      w1_bf, params["b1"],
      w2_bf, params["b2"])


# ---------------------------------------------------------------------------
# Deterministic parameter init (shapes per MaskedAttentionBlock.__init__)
# ---------------------------------------------------------------------------
def init_params(key, D):
    ks = jax.random.split(key, 12)
    w = lambda k, shape: jax.random.normal(k, shape, jnp.float32) * 0.02
    return dict(
        ln1_g=jnp.ones((1, D), jnp.float32),
        ln1_b=jnp.zeros((1, D), jnp.float32),
        wq=w(ks[0], (D, D)), bq=w(ks[1], (1, D)),
        wk=w(ks[2], (D, D)), bk=w(ks[3], (1, D)),
        wv=w(ks[4], (D, D)), bv=w(ks[5], (1, D)),
        wo=w(ks[6], (D, D)), bo=w(ks[7], (1, D)),
        ln2_g=jnp.ones((1, D), jnp.float32),
        ln2_b=jnp.zeros((1, D), jnp.float32),
        w1=w(ks[8], (D, 4 * D)), b1=w(ks[9], (1, 4 * D)),
        w2=w(ks[10], (4 * D, D)), b2=w(ks[11], (1, D)),
    )


# ---------------------------------------------------------------------------
# Pure-JAX reference (mirrors the torch CPU fallback path, eval mode, f32)
# ---------------------------------------------------------------------------
def reference(x, adj_mask, params, num_heads):
    B, S, D = x.shape
    H = num_heads
    Dh = D // H
    nx = _layernorm(x, params["ln1_g"], params["ln1_b"])
    q = nx @ params["wq"] + params["bq"]
    k = nx @ params["wk"] + params["bk"]
    v = nx @ params["wv"] + params["bv"]
    qh = q.reshape(B, S, H, Dh).transpose(0, 2, 1, 3)
    kh = k.reshape(B, S, H, Dh).transpose(0, 2, 1, 3)
    vh = v.reshape(B, S, H, Dh).transpose(0, 2, 1, 3)
    scores = jnp.einsum("bhqd,bhkd->bhqk", qh, kh) / math.sqrt(Dh)
    scores = jnp.where(adj_mask[:, None, :, :], scores, NEG_INF)
    w = jax.nn.softmax(scores, axis=-1)
    a = jnp.einsum("bhqk,bhkd->bhqd", w, vh)
    a = a.transpose(0, 2, 1, 3).reshape(B, S, D)
    a = a @ params["wo"] + params["bo"]
    x1 = x + a
    n2 = _layernorm(x1, params["ln2_g"], params["ln2_b"])
    h = n2 @ params["w1"] + params["b1"]
    h = 0.5 * h * (1.0 + lax.erf(h / math.sqrt(2.0)))   # exact erf GELU
    mlp = h @ params["w2"] + params["b2"]
    return x1 + mlp


if __name__ == "__main__":
    B, S, D, H = 2, 8, 32, 4          # hidden=32, num_heads=4 -> head_dim=8
    key = jax.random.PRNGKey(0)
    kx, kmask, kp = jax.random.split(key, 3)

    x = jax.random.normal(kx, (B, S, D), jnp.float32)
    adj_mask = jax.random.bernoulli(kmask, 0.5, (B, S, S))
    adj_mask = adj_mask | jnp.eye(S, dtype=jnp.bool_)[None]   # keep self edges
    params = init_params(kp, D)

    out = masked_attention_block(x, adj_mask, params, H)
    out = jax.block_until_ready(out)

    ref = reference(x, adj_mask, params, H)
    assert out.shape == (B, S, D)
    err = float(jnp.max(jnp.abs(out - ref)))
    # Tolerance accounts for bf16 MXU operands + tanh-approx GELU vs exact erf.
    assert jnp.allclose(out, ref, atol=1e-2, rtol=1e-2), f"max abs err {err}"

    print("KERNEL_OK")
</pallas_src>

<mosaic_0001>
module attributes {stable_mosaic.version = 11 : i64} {
  func.func @_fused_mab_kernel(%arg0: i32, %arg1: memref<1x8x32xf32, #tpu.memory_space<vmem>>, %arg2: memref<1x8x8xbf16, #tpu.memory_space<vmem>>, %arg3: memref<12x32x8xbf16, #tpu.memory_space<vmem>>, %arg4: memref<12x1x8xf32, #tpu.memory_space<vmem>>, %arg5: memref<1x32xf32, #tpu.memory_space<vmem>>, %arg6: memref<1x32xf32, #tpu.memory_space<vmem>>, %arg7: memref<4x8x32xbf16, #tpu.memory_space<vmem>>, %arg8: memref<1x32xf32, #tpu.memory_space<vmem>>, %arg9: memref<1x32xf32, #tpu.memory_space<vmem>>, %arg10: memref<1x32xf32, #tpu.memory_space<vmem>>, %arg11: memref<32x128xbf16, #tpu.memory_space<vmem>>, %arg12: memref<1x128xf32, #tpu.memory_space<vmem>>, %arg13: memref<128x32xbf16, #tpu.memory_space<vmem>>, %arg14: memref<1x32xf32, #tpu.memory_space<vmem>>, %arg15: memref<1x8x32xf32, #tpu.memory_space<vmem>>) attributes {dimension_semantics = [#tpu.dimension_semantics<parallel>], iteration_bounds = array<i64: 2>, scalar_prefetch = 0 : i64, scratch_operands = 0 : i64, tpu.core_type = #tpu.core_type<tc>, window_params = [{transform_indices = @transform_0, window_bounds = array<i64: 1, 8, 32>}, {transform_indices = @transform_1, window_bounds = array<i64: 1, 8, 8>}, {pipeline_mode = #tpu.pipeline_mode<synchronous>, transform_indices = @transform_2, window_bounds = array<i64: 12, 32, 8>}, {pipeline_mode = #tpu.pipeline_mode<synchronous>, transform_indices = @transform_3, window_bounds = array<i64: 12, 1, 8>}, {pipeline_mode = #tpu.pipeline_mode<synchronous>, transform_indices = @transform_4, window_bounds = array<i64: 1, 32>}, {pipeline_mode = #tpu.pipeline_mode<synchronous>, transform_indices = @transform_5, window_bounds = array<i64: 1, 32>}, {pipeline_mode = #tpu.pipeline_mode<synchronous>, transform_indices = @transform_6, window_bounds = array<i64: 4, 8, 32>}, {pipeline_mode = #tpu.pipeline_mode<synchronous>, transform_indices = @transform_7, window_bounds = array<i64: 1, 32>}, {pipeline_mode = #tpu.pipeline_mode<synchronous>, transform_indices = @transform_8, window_bounds = array<i64: 1, 32>}, {pipeline_mode = #tpu.pipeline_mode<synchronous>, transform_indices = @transform_9, window_bounds = array<i64: 1, 32>}, {pipeline_mode = #tpu.pipeline_mode<synchronous>, transform_indices = @transform_10, window_bounds = array<i64: 32, 128>}, {pipeline_mode = #tpu.pipeline_mode<synchronous>, transform_indices = @transform_11, window_bounds = array<i64: 1, 128>}, {pipeline_mode = #tpu.pipeline_mode<synchronous>, transform_indices = @transform_12, window_bounds = array<i64: 128, 32>}, {pipeline_mode = #tpu.pipeline_mode<synchronous>, transform_indices = @transform_13, window_bounds = array<i64: 1, 32>}, {transform_indices = @transform_14, window_bounds = array<i64: 1, 8, 32>}]} {
    %c0 = arith.constant 0 : index
    %c0_0 = arith.constant 0 : index
    %c0_1 = arith.constant 0 : index
    %0 = vector.load %arg1[%c0, %c0_0, %c0_1] : memref<1x8x32xf32, #tpu.memory_space<vmem>>, vector<1x8x32xf32>
    %1 = vector.shape_cast %0 : vector<1x8x32xf32> to vector<8x32xf32>
    %c0_2 = arith.constant 0 : index
    %c0_3 = arith.constant 0 : index
    %c0_4 = arith.constant 0 : index
    %2 = vector.load %arg2[%c0_2, %c0_3, %c0_4] : memref<1x8x8xbf16, #tpu.memory_space<vmem>>, vector<1x8x8xbf16>
    %3 = vector.shape_cast %2 : vector<1x8x8xbf16> to vector<8x8xbf16>
    %cst = arith.constant 5.000000e-01 : bf16
    %4 = vector.broadcast %cst : bf16 to vector<8x8xbf16>
    %5 = arith.cmpf ogt, %3, %4 : vector<8x8xbf16>
    %c0_5 = arith.constant 0 : index
    %c0_6 = arith.constant 0 : index
    %6 = vector.load %arg5[%c0_5, %c0_6] : memref<1x32xf32, #tpu.memory_space<vmem>>, vector<1x32xf32>
    %c0_7 = arith.constant 0 : index
    %c0_8 = arith.constant 0 : index
    %7 = vector.load %arg6[%c0_7, %c0_8] : memref<1x32xf32, #tpu.memory_space<vmem>>, vector<1x32xf32>
    %cst_9 = arith.constant dense<0.000000e+00> : vector<8xf32>
    %8 = vector.multi_reduction <add>, %1, %cst_9 [1] : vector<8x32xf32> to vector<8xf32>
    %9 = vector.shape_cast %8 : vector<8xf32> to vector<8x1xf32>
    %cst_10 = arith.constant 3.200000e+01 : f32
    %10 = vector.broadcast %cst_10 : f32 to vector<8x1xf32>
    %11 = arith.divf %9, %10 : vector<8x1xf32>
    %12 = vector.broadcast %11 : vector<8x1xf32> to vector<8x32xf32>
    %13 = arith.subf %1, %12 : vector<8x32xf32>
    %14 = arith.mulf %13, %13 : vector<8x32xf32>
    %cst_11 = arith.constant dense<0.000000e+00> : vector<8xf32>
    %15 = vector.multi_reduction <add>, %14, %cst_11 [1] : vector<8x32xf32> to vector<8xf32>
    %16 = vector.shape_cast %15 : vector<8xf32> to vector<8x1xf32>
    %cst_12 = arith.constant 3.200000e+01 : f32
    %17 = vector.broadcast %cst_12 : f32 to vector<8x1xf32>
    %18 = arith.divf %16, %17 : vector<8x1xf32>
    %19 = vector.broadcast %11 : vector<8x1xf32> to vector<8x32xf32>
    %20 = arith.subf %1, %19 : vector<8x32xf32>
    %cst_13 = arith.constant 9.99999974E-6 : f32
    %21 = vector.broadcast %cst_13 : f32 to vector<8x1xf32>
    %22 = arith.addf %18, %21 : vector<8x1xf32>
    %23 = math.rsqrt %22 : vector<8x1xf32>
    %24 = vector.broadcast %23 : vector<8x1xf32> to vector<8x32xf32>
    %25 = arith.mulf %20, %24 : vector<8x32xf32>
    %26 = vector.broadcast %6 : vector<1x32xf32> to vector<8x32xf32>
    %27 = arith.mulf %25, %26 : vector<8x32xf32>
    %28 = vector.broadcast %7 : vector<1x32xf32> to vector<8x32xf32>
    %29 = arith.addf %27, %28 : vector<8x32xf32>
    %30 = arith.truncf %29 : vector<8x32xf32> to vector<8x32xbf16>
    %cst_14 = arith.constant 0.000000e+00 : f32
    %31 = vector.broadcast %cst_14 : f32 to vector<8x32xf32>
    %c0_i32 = arith.constant 0 : i32
    %c4_i32 = arith.constant 4 : i32
    %32 = arith.addi %c0_i32, %c4_i32 : i32
    %c1_i32 = arith.constant 1 : i32
    %33 = scf.for %arg16 = %c0_i32 to %32 step %c1_i32 iter_args(%arg17 = %31) -> (vector<8x32xf32>)  : i32 {
      %91 = arith.index_cast %arg16 : i32 to index
      %c0_44 = arith.constant 0 : index
      %c0_45 = arith.constant 0 : index
      %92 = vector.load %arg3[%91, %c0_44, %c0_45] : memref<12x32x8xbf16, #tpu.memory_space<vmem>>, vector<1x32x8xbf16>
      %93 = vector.shape_cast %92 : vector<1x32x8xbf16> to vector<32x8xbf16>
      %cst_46 = arith.constant dense<0.000000e+00> : vector<8x8xf32>
      %94 = tpu.matmul %30, %93, %cst_46 {dimension_numbers = #tpu.dot_dimension_numbers<[1], [0], [0], [1], [0, 0, 1, 1], [], []>} : vector<8x32xbf16>, vector<32x8xbf16>, vector<8x8xf32> -> vector<8x8xf32>
      %95 = arith.index_cast %arg16 : i32 to index
      %c0_47 = arith.constant 0 : index
      %c0_48 = arith.constant 0 : index
      %96 = vector.load %arg4[%95, %c0_47, %c0_48] : memref<12x1x8xf32, #tpu.memory_space<vmem>>, vector<1x1x8xf32>
      %97 = vector.shape_cast %96 : vector<1x1x8xf32> to vector<1x8xf32>
      %98 = vector.broadcast %97 : vector<1x8xf32> to vector<8x8xf32>
      %99 = arith.addf %94, %98 : vector<8x8xf32>
      %c4_i32_49 = arith.constant 4 : i32
      %100 = arith.addi %c4_i32_49, %arg16 : i32
      %101 = arith.index_cast %100 : i32 to index
      %c0_50 = arith.constant 0 : index
      %c0_51 = arith.constant 0 : index
      %102 = vector.load %arg3[%101, %c0_50, %c0_51] : memref<12x32x8xbf16, #tpu.memory_space<vmem>>, vector<1x32x8xbf16>
      %103 = vector.shape_cast %102 : vector<1x32x8xbf16> to vector<32x8xbf16>
      %cst_52 = arith.constant dense<0.000000e+00> : vector<8x8xf32>
      %104 = tpu.matmul %30, %103, %cst_52 {dimension_numbers = #tpu.dot_dimension_numbers<[1], [0], [0], [1], [0, 0, 1, 1], [], []>} : vector<8x32xbf16>, vector<32x8xbf16>, vector<8x8xf32> -> vector<8x8xf32>
      %c4_i32_53 = arith.constant 4 : i32
      %105 = arith.addi %c4_i32_53, %arg16 : i32
      %106 = arith.index_cast %105 : i32 to index
      %c0_54 = arith.constant 0 : index
      %c0_55 = arith.constant 0 : index
      %107 = vector.load %arg4[%106, %c0_54, %c0_55] : memref<12x1x8xf32, #tpu.memory_space<vmem>>, vector<1x1x8xf32>
      %108 = vector.shape_cast %107 : vector<1x1x8xf32> to vector<1x8xf32>
      %109 = vector.broadcast %108 : vector<1x8xf32> to vector<8x8xf32>
      %110 = arith.addf %104, %109 : vector<8x8xf32>
      %c8_i32 = arith.constant 8 : i32
      %111 = arith.addi %c8_i32, %arg16 : i32
      %112 = arith.index_cast %111 : i32 to index
      %c0_56 = arith.constant 0 : index
      %c0_57 = arith.constant 0 : index
      %113 = vector.load %arg3[%112, %c0_56, %c0_57] : memref<12x32x8xbf16, #tpu.memory_space<vmem>>, vector<1x32x8xbf16>
      %114 = vector.shape_cast %113 : vector<1x32x8xbf16> to vector<32x8xbf16>
      %cst_58 = arith.constant dense<0.000000e+00> : vector<8x8xf32>
      %115 = tpu.matmul %30, %114, %cst_58 {dimension_numbers = #tpu.dot_dimension_numbers<[1], [0], [0], [1], [0, 0, 1, 1], [], []>} : vector<8x32xbf16>, vector<32x8xbf16>, vector<8x8xf32> -> vector<8x8xf32>
      %c8_i32_59 = arith.constant 8 : i32
      %116 = arith.addi %c8_i32_59, %arg16 : i32
      %117 = arith.index_cast %116 : i32 to index
      %c0_60 = arith.constant 0 : index
      %c0_61 = arith.constant 0 : index
      %118 = vector.load %arg4[%117, %c0_60, %c0_61] : memref<12x1x8xf32, #tpu.memory_space<vmem>>, vector<1x1x8xf32>
      %119 = vector.shape_cast %118 : vector<1x1x8xf32> to vector<1x8xf32>
      %120 = vector.broadcast %119 : vector<1x8xf32> to vector<8x8xf32>
      %121 = arith.addf %115, %120 : vector<8x8xf32>
      %122 = arith.truncf %99 : vector<8x8xf32> to vector<8x8xbf16>
      %123 = arith.truncf %110 : vector<8x8xf32> to vector<8x8xbf16>
      %cst_62 = arith.constant dense<0.000000e+00> : vector<8x8xf32>
      %124 = tpu.matmul %122, %123, %cst_62 {dimension_numbers = #tpu.dot_dimension_numbers<[1], [1], [0], [0], [0, 0, 1, 0], [], []>} : vector<8x8xbf16>, vector<8x8xbf16>, vector<8x8xf32> -> vector<8x8xf32>
      %cst_63 = arith.constant -1.000000e+09 : f32
      %125 = vector.broadcast %cst_63 : f32 to vector<8x8xf32>
      %126 = arith.select %5, %124, %125 : vector<8x8xi1>, vector<8x8xf32>
      %cst_64 = arith.constant dense<0xFF800000> : vector<8xf32>
      %127 = vector.multi_reduction <maximumf>, %126, %cst_64 [1] : vector<8x8xf32> to vector<8xf32>
      %128 = vector.shape_cast %127 : vector<8xf32> to vector<8x1xf32>
      %129 = vector.broadcast %128 : vector<8x1xf32> to vector<8x8xf32>
      %130 = arith.subf %126, %129 : vector<8x8xf32>
      %131 = math.exp %130 : vector<8x8xf32>
      %cst_65 = arith.constant dense<0.000000e+00> : vector<8xf32>
      %132 = vector.multi_reduction <add>, %131, %cst_65 [1] : vector<8x8xf32> to vector<8xf32>
      %133 = vector.shape_cast %132 : vector<8xf32> to vector<8x1xf32>
      %134 = tpu.reciprocal %133 {approx = true} : vector<8x1xf32> -> vector<8x1xf32>
      %135 = arith.truncf %131 : vector<8x8xf32> to vector<8x8xbf16>
      %136 = arith.truncf %121 : vector<8x8xf32> to vector<8x8xbf16>
      %cst_66 = arith.constant dense<0.000000e+00> : vector<8x8xf32>
      %137 = tpu.matmul %135, %136, %cst_66 {dimension_numbers = #tpu.dot_dimension_numbers<[1], [0], [0], [1], [0, 0, 1, 1], [], []>} : vector<8x8xbf16>, vector<8x8xbf16>, vector<8x8xf32> -> vector<8x8xf32>
      %138 = vector.broadcast %134 : vector<8x1xf32> to vector<8x8xf32>
      %139 = arith.mulf %137, %138 : vector<8x8xf32>
      %140 = arith.truncf %139 : vector<8x8xf32> to vector<8x8xbf16>
      %141 = arith.index_cast %arg16 : i32 to index
      %c0_67 = arith.constant 0 : index
      %c0_68 = arith.constant 0 : index
      %142 = vector.load %arg7[%141, %c0_67, %c0_68] : memref<4x8x32xbf16, #tpu.memory_space<vmem>>, vector<1x8x32xbf16>
      %143 = vector.shape_cast %142 : vector<1x8x32xbf16> to vector<8x32xbf16>
      %cst_69 = arith.constant dense<0.000000e+00> : vector<8x32xf32>
      %144 = tpu.matmul %140, %143, %cst_69 {dimension_numbers = #tpu.dot_dimension_numbers<[1], [0], [0], [1], [0, 0, 1, 1], [], []>} : vector<8x8xbf16>, vector<8x32xbf16>, vector<8x32xf32> -> vector<8x32xf32>
      %145 = arith.addf %arg17, %144 : vector<8x32xf32>
      scf.yield %145 : vector<8x32xf32>
    }
    %c4_i32_15 = arith.constant 4 : i32
    %34 = arith.addf %1, %33 : vector<8x32xf32>
    %c0_16 = arith.constant 0 : index
    %c0_17 = arith.constant 0 : index
    %35 = vector.load %arg8[%c0_16, %c0_17] : memref<1x32xf32, #tpu.memory_space<vmem>>, vector<1x32xf32>
    %36 = vector.broadcast %35 : vector<1x32xf32> to vector<8x32xf32>
    %37 = arith.addf %34, %36 : vector<8x32xf32>
    %c0_18 = arith.constant 0 : index
    %c0_19 = arith.constant 0 : index
    %38 = vector.load %arg9[%c0_18, %c0_19] : memref<1x32xf32, #tpu.memory_space<vmem>>, vector<1x32xf32>
    %c0_20 = arith.constant 0 : index
    %c0_21 = arith.constant 0 : index
    %39 = vector.load %arg10[%c0_20, %c0_21] : memref<1x32xf32, #tpu.memory_space<vmem>>, vector<1x32xf32>
    %cst_22 = arith.constant dense<0.000000e+00> : vector<8xf32>
    %40 = vector.multi_reduction <add>, %37, %cst_22 [1] : vector<8x32xf32> to vector<8xf32>
    %41 = vector.shape_cast %40 : vector<8xf32> to vector<8x1xf32>
    %cst_23 = arith.constant 3.200000e+01 : f32
    %42 = vector.broadcast %cst_23 : f32 to vector<8x1xf32>
    %43 = arith.divf %41, %42 : vector<8x1xf32>
    %44 = vector.broadcast %43 : vector<8x1xf32> to vector<8x32xf32>
    %45 = arith.subf %37, %44 : vector<8x32xf32>
    %46 = arith.mulf %45, %45 : vector<8x32xf32>
    %cst_24 = arith.constant dense<0.000000e+00> : vector<8xf32>
    %47 = vector.multi_reduction <add>, %46, %cst_24 [1] : vector<8x32xf32> to vector<8xf32>
    %48 = vector.shape_cast %47 : vector<8xf32> to vector<8x1xf32>
    %cst_25 = arith.constant 3.200000e+01 : f32
    %49 = vector.broadcast %cst_25 : f32 to vector<8x1xf32>
    %50 = arith.divf %48, %49 : vector<8x1xf32>
    %51 = vector.broadcast %43 : vector<8x1xf32> to vector<8x32xf32>
    %52 = arith.subf %37, %51 : vector<8x32xf32>
    %cst_26 = arith.constant 9.99999974E-6 : f32
    %53 = vector.broadcast %cst_26 : f32 to vector<8x1xf32>
    %54 = arith.addf %50, %53 : vector<8x1xf32>
    %55 = math.rsqrt %54 : vector<8x1xf32>
    %56 = vector.broadcast %55 : vector<8x1xf32> to vector<8x32xf32>
    %57 = arith.mulf %52, %56 : vector<8x32xf32>
    %58 = vector.broadcast %38 : vector<1x32xf32> to vector<8x32xf32>
    %59 = arith.mulf %57, %58 : vector<8x32xf32>
    %60 = vector.broadcast %39 : vector<1x32xf32> to vector<8x32xf32>
    %61 = arith.addf %59, %60 : vector<8x32xf32>
    %62 = arith.truncf %61 : vector<8x32xf32> to vector<8x32xbf16>
    %c0_27 = arith.constant 0 : index
    %c0_28 = arith.constant 0 : index
    %63 = vector.load %arg11[%c0_27, %c0_28] : memref<32x128xbf16, #tpu.memory_space<vmem>>, vector<32x128xbf16>
    %cst_29 = arith.constant dense<0.000000e+00> : vector<8x128xf32>
    %64 = tpu.matmul %62, %63, %cst_29 {dimension_numbers = #tpu.dot_dimension_numbers<[1], [0], [0], [1], [0, 0, 1, 1], [], []>} : vector<8x32xbf16>, vector<32x128xbf16>, vector<8x128xf32> -> vector<8x128xf32>
    %c0_30 = arith.constant 0 : index
    %c0_31 = arith.constant 0 : index
    %65 = vector.load %arg12[%c0_30, %c0_31] : memref<1x128xf32, #tpu.memory_space<vmem>>, vector<1x128xf32>
    %66 = vector.broadcast %65 : vector<1x128xf32> to vector<8x128xf32>
    %67 = arith.addf %64, %66 : vector<8x128xf32>
    %cst_32 = arith.constant 5.000000e-01 : f32
    %68 = vector.broadcast %cst_32 : f32 to vector<8x128xf32>
    %69 = arith.mulf %68, %67 : vector<8x128xf32>
    %cst_33 = arith.constant 4.471500e-02 : f32
    %70 = vector.broadcast %cst_33 : f32 to vector<8x128xf32>
    %71 = arith.mulf %70, %67 : vector<8x128xf32>
    %72 = arith.mulf %71, %67 : vector<8x128xf32>
    %73 = arith.mulf %72, %67 : vector<8x128xf32>
    %74 = arith.addf %67, %73 : vector<8x128xf32>
    %cst_34 = arith.constant 0.797884583 : f32
    %75 = vector.broadcast %cst_34 : f32 to vector<8x128xf32>
    %76 = arith.mulf %75, %74 : vector<8x128xf32>
    %77 = math.tanh %76 : vector<8x128xf32>
    %cst_35 = arith.constant 1.000000e+00 : f32
    %78 = vector.broadcast %cst_35 : f32 to vector<8x128xf32>
    %79 = arith.addf %78, %77 : vector<8x128xf32>
    %80 = arith.mulf %69, %79 : vector<8x128xf32>
    %81 = arith.truncf %80 : vector<8x128xf32> to vector<8x128xbf16>
    %c0_36 = arith.constant 0 : index
    %c0_37 = arith.constant 0 : index
    %82 = vector.load %arg13[%c0_36, %c0_37] : memref<128x32xbf16, #tpu.memory_space<vmem>>, vector<128x32xbf16>
    %cst_38 = arith.constant dense<0.000000e+00> : vector<8x32xf32>
    %83 = tpu.matmul %81, %82, %cst_38 {dimension_numbers = #tpu.dot_dimension_numbers<[1], [0], [0], [1], [0, 0, 1, 1], [], []>} : vector<8x128xbf16>, vector<128x32xbf16>, vector<8x32xf32> -> vector<8x32xf32>
    %c0_39 = arith.constant 0 : index
    %c0_40 = arith.constant 0 : index
    %84 = vector.load %arg14[%c0_39, %c0_40] : memref<1x32xf32, #tpu.memory_space<vmem>>, vector<1x32xf32>
    %85 = vector.broadcast %84 : vector<1x32xf32> to vector<8x32xf32>
    %86 = arith.addf %83, %85 : vector<8x32xf32>
    %87 = arith.addf %37, %86 : vector<8x32xf32>
    %c0_41 = arith.constant 0 : index
    %c0_42 = arith.constant 0 : index
    %c0_43 = arith.constant 0 : index
    %88 = vector.load %arg15[%c0_41, %c0_42, %c0_43] : memref<1x8x32xf32, #tpu.memory_space<vmem>>, vector<1x8x32xf32>
    %89 = vector.shape_cast %88 : vector<1x8x32xf32> to vector<8x32xf32>
    %90 = vector.shape_cast %87 : vector<8x32xf32> to vector<1x8x32xf32>
    tpu.vector_store %arg15[%c0_41, %c0_42, %c0_43], %90 {strides = array<i32>} : memref<1x8x32xf32, #tpu.memory_space<vmem>>, vector<1x8x32xf32>,
    return
  }
  func.func @transform_0(%arg0: i32) -> (i32, i32, i32) {
    %c0_i32 = arith.constant 0 : i32
    %c0_i32_0 = arith.constant 0 : i32
    %c0_i32_1 = arith.constant 0 : i32
    return %arg0, %c0_i32, %c0_i32_0 : i32, i32, i32
  }
  func.func @transform_1(%arg0: i32) -> (i32, i32, i32) {
    %c0_i32 = arith.constant 0 : i32
    %c0_i32_0 = arith.constant 0 : i32
    %c0_i32_1 = arith.constant 0 : i32
    return %arg0, %c0_i32, %c0_i32_0 : i32, i32, i32
  }
  func.func @transform_2(%arg0: i32) -> (i32, i32, i32) {
    %c0_i32 = arith.constant 0 : i32
    %c0_i32_0 = arith.constant 0 : i32
    %c0_i32_1 = arith.constant 0 : i32
    %c0_i32_2 = arith.constant 0 : i32
    return %c0_i32, %c0_i32_0, %c0_i32_1 : i32, i32, i32
  }
  func.func @transform_3(%arg0: i32) -> (i32, i32, i32) {
    %c0_i32 = arith.constant 0 : i32
    %c0_i32_0 = arith.constant 0 : i32
    %c0_i32_1 = arith.constant 0 : i32
    %c0_i32_2 = arith.constant 0 : i32
    return %c0_i32, %c0_i32_0, %c0_i32_1 : i32, i32, i32
  }
  func.func @transform_4(%arg0: i32) -> (i32, i32) {
    %c0_i32 = arith.constant 0 : i32
    %c0_i32_0 = arith.constant 0 : i32
    %c0_i32_1 = arith.constant 0 : i32
    return %c0_i32, %c0_i32_0 : i32, i32
  }
  func.func @transform_5(%arg0: i32) -> (i32, i32) {
    %c0_i32 = arith.constant 0 : i32
    %c0_i32_0 = arith.constant 0 : i32
    %c0_i32_1 = arith.constant 0 : i32
    return %c0_i32, %c0_i32_0 : i32, i32
  }
  func.func @transform_6(%arg0: i32) -> (i32, i32, i32) {
    %c0_i32 = arith.constant 0 : i32
    %c0_i32_0 = arith.constant 0 : i32
    %c0_i32_1 = arith.constant 0 : i32
    %c0_i32_2 = arith.constant 0 : i32
    return %c0_i32, %c0_i32_0, %c0_i32_1 : i32, i32, i32
  }
  func.func @transform_7(%arg0: i32) -> (i32, i32) {
    %c0_i32 = arith.constant 0 : i32
    %c0_i32_0 = arith.constant 0 : i32
    %c0_i32_1 = arith.constant 0 : i32
    return %c0_i32, %c0_i32_0 : i32, i32
  }
  func.func @transform_8(%arg0: i32) -> (i32, i32) {
    %c0_i32 = arith.constant 0 : i32
    %c0_i32_0 = arith.constant 0 : i32
    %c0_i32_1 = arith.constant 0 : i32
    return %c0_i32, %c0_i32_0 : i32, i32
  }
  func.func @transform_9(%arg0: i32) -> (i32, i32) {
    %c0_i32 = arith.constant 0 : i32
    %c0_i32_0 = arith.constant 0 : i32
    %c0_i32_1 = arith.constant 0 : i32
    return %c0_i32, %c0_i32_0 : i32, i32
  }
  func.func @transform_10(%arg0: i32) -> (i32, i32) {
    %c0_i32 = arith.constant 0 : i32
    %c0_i32_0 = arith.constant 0 : i32
    %c0_i32_1 = arith.constant 0 : i32
    return %c0_i32, %c0_i32_0 : i32, i32
  }
  func.func @transform_11(%arg0: i32) -> (i32, i32) {
    %c0_i32 = arith.constant 0 : i32
    %c0_i32_0 = arith.constant 0 : i32
    %c0_i32_1 = arith.constant 0 : i32
    return %c0_i32, %c0_i32_0 : i32, i32
  }
  func.func @transform_12(%arg0: i32) -> (i32, i32) {
    %c0_i32 = arith.constant 0 : i32
    %c0_i32_0 = arith.constant 0 : i32
    %c0_i32_1 = arith.constant 0 : i32
    return %c0_i32, %c0_i32_0 : i32, i32
  }
  func.func @transform_13(%arg0: i32) -> (i32, i32) {
    %c0_i32 = arith.constant 0 : i32
    %c0_i32_0 = arith.constant 0 : i32
    %c0_i32_1 = arith.constant 0 : i32
    return %c0_i32, %c0_i32_0 : i32, i32
  }
  func.func @transform_14(%arg0: i32) -> (i32, i32, i32) {
    %c0_i32 = arith.constant 0 : i32
    %c0_i32_0 = arith.constant 0 : i32
    %c0_i32_1 = arith.constant 0 : i32
    return %arg0, %c0_i32, %c0_i32_0 : i32, i32, i32
  }
}

</mosaic_0001>

<bundles_post_ra>
// kernel: tpu_custom_call.1
= control target key start
LH: loop header
LB: loop body
LE: loop exit
PB: predicated region body
PF: predicated region fallthrough
CT: control target
= control target key end

     0   :  { %s1877_s0 = inlined_call_operand.vmem [shape: f32[2,8,32], index: 0, kind: input, shape index: {}]   ;;  %s1878_s1 = inlined_call_operand.vmem [shape: bf16[2,8,8], index: 1, kind: input, shape index: {}]   ;;  %s1879_s2 = inlined_call_operand.vmem [shape: bf16[12,32,8], index: 2, kind: input, shape index: {}]   ;;  %s1880_s3 = inlined_call_operand.vmem [shape: f32[12,1,8], index: 3, kind: input, shape index: {}]   ;;  %s1881_s4 = inlined_call_operand.vmem [shape: f32[1,32], index: 4, kind: input, shape index: {}]   ;;  %s1882_s5 = inlined_call_operand.vmem [shape: f32[1,32], index: 5, kind: input, shape index: {}]   ;;  %s1883_s6 = inlined_call_operand.vmem [shape: bf16[4,8,32], index: 6, kind: input, shape index: {}]   ;;  %s1884_s7 = inlined_call_operand.vmem [shape: f32[1,32], index: 7, kind: input, shape index: {}]   ;;  %s1885_s8 = inlined_call_operand.vmem [shape: f32[1,32], index: 8, kind: input, shape index: {}]   ;;  %s1886_s9 = inlined_call_operand.vmem [shape: f32[1,32], index: 9, kind: input, shape index: {}]   ;;  %s1887_s10 = inlined_call_operand.vmem [shape: bf16[32,128], index: 10, kind: input, shape index: {}]   ;;  %s1888_s11 = inlined_call_operand.vmem [shape: f32[1,128], index: 11, kind: input, shape index: {}]   ;;  %s1889_s12 = inlined_call_operand.vmem [shape: bf16[128,32], index: 12, kind: input, shape index: {}]   ;;  %s1890_s13 = inlined_call_operand.vmem [shape: f32[1,32], index: 13, kind: input, shape index: {}]   ;;  %s1891_s14 = inlined_call_operand.hbm [shape: f32[2,8,32], index: 14, kind: output, shape index: {}]  }
   0x1   :  { %1894 = sst [smem:[#allocation7_spill]] %s1877_s0 }
   0x2   :  { %1895 = sst [smem:[#allocation8_spill]] %s1878_s1 }
   0x3   :  { %19 = vsyncpa [#allocation3], 0 }
   0x4   :  { %21 = vsyncpa [#allocation3 + $0x1], 0  ;;  %s1636_s29 = smov 0   ;;  %s1638_s30 = smov 0  }
   0x5   :  { %s1640_s15 = smov 0   ;;  %s1642_s16 = smov 0  }
   0x6 LB: > { %1896 = sst [smem:[#allocation5_spill]] %s1541_s15  ;;  %s1657_s17 = sadd.s32 4294967295, %s1545_s16   ;;  %s1545_s16 = sphi %s1642_s16, %s1910_s16   ;;  %s1541_s15 = sphi %s1640_s15, %s1907_s15   ;;  %s1537_s30 = sphi %s1638_s30, %s1909_s30   ;;  %s1533_s29 = sphi %s1636_s29, %s1908_s29  }
   0x7   : > { %s1232_s18 = sadd.s32 4294967294, %s1545_s16   ;;  %s1661_s19 = sadd.s32 1, %s1545_s16  }
   0x8   : > { %s338_s20 = sadd.s32 1, %s1541_s15  ;;  %s335_s21 = ssub.s32 %s1545_s16, %s1661_s19 }
   0x9   : > { %p348_p0 = scmp.ne.s32.totalorder %s1541_s15, %s1537_s30  ;;  %p336_p1 = scmp.eq.s32.totalorder %s335_s21, 0 }
   0xa   : > { %p349_p2 = scmp.eq.s32.totalorder %s1657_s17, 1  ;;  %p354_p3 = scmp.ne.s32.totalorder %s1537_s30, %s1533_s29 }
   0xb   : > { %p355_p4 = scmp.eq.s32.totalorder %s1232_s18, 1  ;;  %p1235_p7 = scmp.ge.s32.totalorder %s1545_s16, 1 }
   0xc   : > { %s1672_s22 = scalar_select %p336_p1, %s1541_s15, %s338_s20  }
   0xd   : > { %p1674_p5 = por %p349_p2, %p348_p0  ;;  %p1678_p6 = por %p355_p4, %p354_p3 }
   0xe   : > { %1897 = sst [smem:[#allocation6_spill]] %s1672_s22  ;;  %p423_p8 = scmp.lt.s32.totalorder %s1545_s16, 3 }
  0x10   : > { %p424_p9 = pnand %p1235_p7, %p423_p8 }
  0x11   : > { %p472_p10 = scmp.lt.s32.totalorder (!%p424_p9), %s1657_s17, 1  ;;  %vm489_vm0 = vcmask (!%p424_p9), 261120   ;;  %s1900_s0 = sld [smem:[#allocation7_spill]] (!%p424_p9)  ;;  %v1239_v12 = vld [vmem:[%s1881_s4] ss:$0 sm:$0xff] (!%p424_p9)  ;;  %v1715_v18 = vmov (!%p424_p9), 0.0  }
  0x12   : > { %427 = sbr.rel (%p424_p9) target bundleno = 2171 (0x87b), region = 76  ;;  %s1901_s1 = sld [smem:[#allocation8_spill]] (!%p424_p9)  ;;  %v1240_v14 = vld [vmem:[%s1882_s5] ss:$0 sm:$0xff] (!%p424_p9) }
  0x13   : > { %s1893_s22 = sand.u32 (!%p424_p9), 1, %s1537_s30  }
  0x19   : > { %s473_s25 = scalar_select %p472_p10, %s1657_s17, 1 }
  0x1b   : > { %s1237_s26 = sshll.u32 %s473_s25, 3  ;;  %s1238_s27 = sshll.u32 %s473_s25, 2 }
  0x1c   : > { %s475_s20 = scalar_lea.vmem %s1900_s0, %s1237_s26  ;;  %s479_s15 = scalar_lea.vmem %s1901_s1, %s1238_s27 }
  0x1d   : > { %v1692_v0 = vld [vmem:[%s475_s20] sm:$0xff]  ;;  %s1704_s25 = sshll.u32 %s1893_s22, 3  ;;  %s1717_s20 = smov 0  }
  0x1e   : > { %v1694_v1 = vld [vmem:[%s479_s15] sm:$0xf]  ;;  %v490_v2 = vsel %vm489_vm0, %v1692_v0, 0.0 }
  0x1f   : > { %vm486_vm1 = vcmp.gt.bf16.partialorder %v1694_v1, 1056980736  ;;  %491 = vadd.xlane.f32.xlu0 %v490_v2 }
  0xac   : > { %v492_v3 = vpop.xlane.xlu0 %491 }
  0xad   : > { %v494_v4 = vmul.f32 0.03125, %v492_v3 }
  0xaf   : > { %v495_v5 = vsub.f32 %v1692_v0, %v494_v4 }
  0xb1   : > { %v496_v6 = vmul.f32 %v495_v5, %v495_v5 }
  0xb3   : > { %v497_v7 = vsel %vm489_vm0, %v496_v6, 0.0 }
  0xb4   : > { %498 = vadd.xlane.f32.xlu0 %v497_v7 }
 0x141   : > { %v499_v8 = vpop.xlane.xlu0 %498 }
 0x142   : > { %v500_v9 = vmul.f32 0.03125, %v499_v8 }
 0x144   : > { %v501_v10 = vadd.f32 1e-05, %v500_v9 }
 0x146   : > { %1449 = vrsqrt.f32 %v501_v10 }
 0x150   : > { %v1450_v11 = vpop.eup %1449 }
 0x151   : > { %v503_v13 = vmul.f32 %v1450_v11, %v495_v5 }
 0x153   : > { %v510_v15 = vmul.f32 %v1239_v12, %v503_v13 }
 0x155   : > { %v517_v16 = vadd.f32 %v1240_v14, %v510_v15 }
 0x157   : > { %v1712_v17 = vpack.c.bf16 %v517_v16, %v517_v16 }
 0x158 LB: >> { %v1555_v19 = vmov 0.0   ;;  %s1291_s21 = sshll.u32 %s1553_s20, 4  ;;  %vm1556_vm2 = vmmov 0   ;;  %s1744_s15 = scalar_lea.vmem %s1880_s3, %s1553_s20  ;;  %vm734_vm3 = vcmask 64512   ;;  %v1557_v41 = vmov 0   ;;  %s1553_s20 = sphi %s1717_s20, %s524_s20   ;;  %v1549_v18 = vphi %v1715_v18, %v1902_v18  }
 0x159   : >> { %1327 = vmatprep.subr.bf16.mxu1 %v1555_v19  ;;  %1319 = vmatprep.subr.bf16.mxu0 %v1555_v19  ;;  %s528_s27 = scalar_lea.vmem %s1879_s2, %s1291_s21  ;;  %v1253_v26 = vld [vmem:[%s1744_s15 + $0x4] ss:$0 sm:$0xff]  ;;  %v1243_v31 = vld [vmem:[%s1744_s15] ss:$0 sm:$0xff]  ;;  %v781_v42 = vsel %vm486_vm1, 65537, %v1557_v41  ;;  %vm800_vm5 = vcmask 1043456  }
 0x15a   : >> { %1331 = vmatprep.mubr.msk.bf16.mxu1 %vm1556_vm2, %v1555_v19  ;;  %1323 = vmatprep.mubr.msk.bf16.mxu0 %vm1556_vm2, %v1555_v19  ;;  %v1451_v20 = vld [vmem:[%s528_s27 + $0x40] sm:$0xff]   ;;  %v1452_v21 = vld [vmem:[%s528_s27 + $0x48] sm:$0xff]   ;;  %v782_v43 = vunpack.c.l.b16 %v781_v42  ;;  %s1269_s26 = sshll.u32 %s1553_s20, 2  ;;  %s524_s20 = sadd.s32 1, %s1553_s20  }
 0x15b   : >> { %1328 = vmatpush3.bf16.msra.mxu1 %v1451_v20  ;;  %v1453_v22 = vld [vmem:[%s528_s27] sm:$0xff]   ;;  %v1454_v23 = vld [vmem:[%s528_s27 + $0x8] sm:$0xff]   ;;  %s847_s21 = scalar_lea.vmem %s1883_s6, %s1269_s26  ;;  %p521_p11 = scmp.ge.s32.totalorder %s524_s20, 4  }
 0x15c   : >> { %1329 = vmatprep.subr.bf16.mxu1 %v1555_v19  ;;  %1320 = vmatpush3.bf16.msra.mxu0 %v1453_v22  ;;  %v1455_v24 = vld [vmem:[%s528_s27 + $0x80] sm:$0xff]   ;;  %v1456_v25 = vld [vmem:[%s528_s27 + $0x88] sm:$0xff]   ;;  %vm783_vm4 = vcmp.ne.s32.totalorder %v782_v43, 0  ;;  %v1558_v1 = vmov (%p521_p11), 0.0   ;;  %vm1559_vm6 = vmmov (%p521_p11), 0   ;;  %v1469_v43 = vld [vmem:[%s1889_s12 + $0x30] sm:$0xff] (%p521_p11)  }
 0x15d   : >> { %1321 = vmatprep.subr.bf16.mxu0 %v1555_v19  ;;  %v1263_v50 = vld [vmem:[%s1744_s15 + $0x8] ss:$0 sm:$0xff]  ;;  %v848_v2 = vld [vmem:[%s847_s21] sm:$0xf]  ;;  %s1288_s22 = sshll.u32 (%p521_p11), %s1657_s17, 7  ;;  %s1903_s18 = scalar_lea.vmem (%p521_p11), [#allocation2], %s1704_s25 }
 0x15e   : >> { %v853_v3 = vsel %vm800_vm5, %v848_v2, 0  ;;  %v1271_v20 = vld [vmem:[%s1884_s7] ss:$0 sm:$0xff] (%p521_p11)  ;;  %v1468_v42 = vld [vmem:[%s1889_s12 + $0x28] sm:$0xff] (%p521_p11)   ;;  %s1138_s20 = sshll.u32 (%p521_p11), %s1903_s18, 4  ;;  %s1830_s21 = scalar_lea.hbm (%p521_p11), %s1891_s14, %s1288_s22  ;;  %s1832_s20 = int_to_ptr.vmem [resolvable:$true] %s1138_s20 }
 0x15f   : >> { %1330 = vmatpush3.bf16.msra.mxu1 %v1452_v21  ;;  %v1467_v41 = vld [vmem:[%s1889_s12 + $0x20] sm:$0xff] (%p521_p11)   ;;  %s1904_s15 = smov (%p521_p11), %s1903_s18  ;;  %s1905_s17 = sand.u32 (%p521_p11), 1, %s1537_s30  }
 0x160   : >> { %1343 = vmatprep.subr.bf16.mxu1 %v1555_v19  ;;  %1322 = vmatpush3.bf16.msra.mxu0 %v1454_v23  ;;  %s1125_s26 = scalar_lea.sflag (%p521_p11), [#allocation3], %s1905_s17  ;;  %s1475_s18 = scalar_lea.vmem (%p521_p11), %s1832_s20, 128 }
 0x161   : >> { %1335 = vmatprep.subr.bf16.mxu0 %v1555_v19  ;;  %p1476_p12 = scmp.ne.s32.totalorder (%p521_p11), %s1832_s20, %s1475_s18  ;;  %s1560_s0 = smov (%p521_p11), [#allocation2]  }
 0x162   : >> { %1332 = vmatmul.mubr.msk.bf16.vlgmr.msra.gmra.mrb[0].mxu1 %vm489_vm0, %v1712_v17  ;;  %s1479_s1 = sshll.u32 (%p521_p11), %s1560_s0, 4  ;;  %s1480_s1 = int_to_ptr.vmem [resolvable:$false] %s1479_s1 }
 0x163   : >> { %1345 = vmatprep.mubr.msk.bf16.mxu1 %vm1556_vm2, %v1555_v19  ;;  %1324 = vmatmul.mubr.msk.bf16.vlgmr.msra.gmra.mrb[0].mxu0 %vm489_vm0, %v1712_v17  ;;  %p1477_p13 = pnand (%p521_p11), %p1476_p12, %p1674_p5  ;;  %s1481_s22 = scalar_lea.vmem (%p521_p11), %s1480_s1, 256 }
 0x164   : >> { %1339 = vmatprep.mubr.msk.bf16.mxu0 %vm1556_vm2, %v1555_v19  ;;  %1336 = vmatpush3.bf16.msra.mxu0 %v1455_v24  ;;  %p1482_p1 = scmp.lt.s32.totalorder (%p521_p11), %s1832_s20, %s1480_s1  ;;  %p1483_p2 = scmp.lt.s32.totalorder (%p521_p11), %s1481_s22, %s1475_s18 }
 0x165   : >> { %1337 = vmatprep.subr.bf16.mxu0 %v1555_v19  ;;  %p1478_p0 = pneg (%p521_p11), %p1477_p13 }
 0x166   : > { %p1484_p3 = por (%p521_p11), %p1483_p2, %p1482_p1 }
 0x168   : >> { %1338 = vmatpush3.bf16.msra.mxu0 %v1456_v25  ;;  %p1485_p4 = pnand (%p521_p11), %p1484_p3, %p1478_p0 }
 0x169   : >> { %1349 = vmatprep.subr.bf16.mxu0 %v1555_v19 }
 0x16b   : >> { %1340 = vmatmul.mubr.msk.bf16.vlgmr.msra.gmra.mrb[4].mxu0 %vm489_vm0, %v1712_v17  ;;  %v1462_v17 = vld [vmem:[%s1887_s10 + $0x8] sm:$0xff] (%p521_p11)  }
 0x16c   : >> { %1351 = vmatprep.mubr.msk.bf16.mxu0 %vm1556_vm2, %v1555_v19 }
 0x235   : >> { %v658_v27 = vpop.f32.mrb[0].mxu1 }
 0x236   : >> { %v659_v28 = vadd.f32 %v1253_v26, %v658_v27  ;;  %v1333_v29 = vpop.f32.mrb[1].mxu1  ;;  %v590_v32 = vpop.f32.mrb[0].mxu0  ;;  %v1463_v27 = vld [vmem:[%s1889_s12] sm:$0xff] (%p521_p11)  }
 0x237   : >> { %v661_v30 = vpop.f32.mrb[2].mxu1  ;;  %v1325_v35 = vpop.f32.mrb[1].mxu0  ;;  %v591_v38 = vadd.f32 %v1243_v31, %v590_v32  ;;  %v1272_v32 = vld [vmem:[%s1885_s8] ss:$0 sm:$0xff] (%p521_p11) }
 0x238   : >> { %v733_v33 = vpack.c.bf16 %v659_v28, %v659_v28  ;;  %v1334_v34 = vpop.f32.mrb[3].mxu1  ;;  %v593_v36 = vpop.f32.mrb[2].mxu0 }
 0x239   : >> { %v1326_v39 = vpop.f32.mrb[3].mxu0  ;;  %v732_v40 = vpack.c.bf16 %v591_v38, %v591_v38  ;;  %v1273_v34 = vld [vmem:[%s1886_s9] ss:$0 sm:$0xff] (%p521_p11)  ;;  %v1464_v38 = vld [vmem:[%s1889_s12 + $0x8] sm:$0xff] (%p521_p11)  }
 0x23a   : >> { %v739_v37 = vsel %vm734_vm3, %v733_v33, 0  ;;  %v1465_v39 = vld [vmem:[%s1889_s12 + $0x10] sm:$0xff] (%p521_p11)  }
 0x23b   : >> { %1344 = vmatpush3.bf16.xpose.msra.mxu1 %v739_v37 }
 0x23c   : >> { %1355 = vmatprep.subr.bf16.mxu1 %v1555_v19 }
 0x23e   : >> { %v726_v51 = vpop.f32.mrb[4].mxu0 }
 0x23f   : >> { %v727_v52 = vadd.f32 %v1263_v50, %v726_v51  ;;  %v1341_v53 = vpop.f32.mrb[5].mxu0 }
 0x240   : >> { %v729_v54 = vpop.f32.mrb[6].mxu0 }
 0x241   : >> { %v796_v55 = vpack.c.bf16 %v727_v52, %v727_v52  ;;  %v1342_v56 = vpop.f32.mrb[7].mxu0 }
 0x242   : >> { %1346 = vmatmul.mubr.msk.bf16.vlgmr.msra.gmra.mrb[4].mxu1 %vm734_vm3, %v732_v40  ;;  %v1466_v40 = vld [vmem:[%s1889_s12 + $0x18] sm:$0xff] (%p521_p11)  }
 0x243   : >> { %1357 = vmatprep.mubr.msk.bf16.mxu1 %vm1556_vm2, %v1555_v19  ;;  %v802_v57 = vsel %vm800_vm5, %v796_v55, 0  ;;  %1356 = vmatpush3.bf16.msra.mxu1 %v853_v3 }
 0x244   : >> { %1350 = vmatpush3.bf16.msra.mxu0 %v802_v57  ;;  %1369 = vmatprep.subr.bf16.mxu1 (%p521_p11), %v1558_v1 }
 0x245   : > { %1361 = vmatprep.subr.bf16.mxu0 (%p521_p11), %v1558_v1 }
 0x315   : >> { %v775_v44 = vpop.f32.mrb[4].mxu1 }
 0x316   : >> { %v784_v45 = vsel %vm783_vm4, %v775_v44, -1e+09  ;;  %v1347_v46 = vpop.f32.mrb[5].mxu1  ;;  %v1470_v44 = vld [vmem:[%s1889_s12 + $0x38] sm:$0xff] (%p521_p11)  }
 0x317   : >> { %v778_v47 = vpop.f32.mrb[6].mxu1  ;;  %v785_v48 = vsel %vm734_vm3, %v784_v45, -inf }
 0x318   : >> { %786 = vmax.xlane.f32.xlu0 %v785_v48  ;;  %v1348_v49 = vpop.f32.mrb[7].mxu1 }
 0x3a5   : >> { %v787_v58 = vpop.xlane.xlu0 %786 }
 0x3a6   : >> { %v788_v59 = vsub.f32 %v784_v45, %v787_v58  ;;  %v1274_v45 = vld [vmem:[%s1888_s11] ss:$0 sm:$0xff] (%p521_p11) }
 0x3a8   : >> { %v789_v60 = vmul.f32 1.442695, %v788_v59 }
 0x3aa   : >> { %1457 = vpow2.f32 %v789_v60 }
 0x3b4   : >> { %v1458_v61 = vpop.eup %1457 }
 0x3b5   : >> { %v791_v62 = vsel %vm734_vm3, %v1458_v61, 0.0  ;;  %v795_v63 = vpack.c.bf16 %v1458_v61, %v1458_v61  ;;  %v1278_v61 = vld [vmem:[%s1890_s13] ss:$0 sm:$0xff] (%p521_p11) }
 0x3b6   : >> { %792 = vadd.xlane.f32.xlu0 %v791_v62 }
 0x3b7   : >> { %1352 = vmatmul.mubr.msk.bf16.vlgmr.msra.gmra.mrb[8].mxu0 %vm734_vm3, %v795_v63 }
 0x3b8   : > { %1365 = vmatprep.mubr.msk.bf16.mxu0 (%p521_p11), %vm1559_vm6, %v1558_v1 }
 0x443   : >> { %v793_v4 = vpop.xlane.xlu0 %792 }
 0x444   : >> { %1459 = vrcp.f32 %v793_v4 }
 0x44e   : >> { %v1460_v5 = vpop.eup %1459 }
 0x48a   : >> { %v838_v6 = vpop.f32.mrb[8].mxu0 }
 0x48b   : >> { %v844_v7 = vmul.f32 %v1460_v5, %v838_v6  ;;  %v1353_v8 = vpop.f32.mrb[9].mxu0 }
 0x48c   : >> { %v841_v9 = vpop.f32.mrb[10].mxu0 }
 0x48d   : >> { %v845_v10 = vpack.c.bf16 %v844_v7, %v844_v7  ;;  %v1354_v11 = vpop.f32.mrb[11].mxu0 }
 0x48f   : >> { %1358 = vmatmul.mubr.msk.bf16.vlgmr.msra.gmra.mrb[8].mxu1 %vm734_vm3, %v845_v10 }
 0x490   : > { %1385 = vmatprep.mubr.msk.bf16.mxu1 (%p521_p11), %vm1559_vm6, %v1558_v1  ;;  %1370 = vmatpush3.bf16.msra.mxu1 (%p521_p11), %v1463_v27 }
 0x491   : > { %1371 = vmatprep.subr.bf16.mxu1 (%p521_p11), %v1558_v1 }
 0x494   : > { %1372 = vmatpush3.bf16.msra.mxu1 (%p521_p11), %v1464_v38 }
 0x495   : > { %1373 = vmatprep.subr.bf16.mxu1 (%p521_p11), %v1558_v1 }
 0x498   : > { %1374 = vmatpush3.bf16.msra.mxu1 (%p521_p11), %v1465_v39 }
 0x499   : > { %1375 = vmatprep.subr.bf16.mxu1 (%p521_p11), %v1558_v1 }
 0x49c   : > { %1376 = vmatpush3.bf16.msra.mxu1 (%p521_p11), %v1466_v40 }
 0x49d   : > { %1377 = vmatprep.subr.bf16.mxu1 (%p521_p11), %v1558_v1 }
 0x4a0   : > { %1378 = vmatpush3.bf16.msra.mxu1 (%p521_p11), %v1467_v41 }
 0x4a1   : > { %1379 = vmatprep.subr.bf16.mxu1 (%p521_p11), %v1558_v1 }
 0x4a4   : > { %1380 = vmatpush3.bf16.msra.mxu1 (%p521_p11), %v1468_v42 }
 0x4a5   : > { %1381 = vmatprep.subr.bf16.mxu1 (%p521_p11), %v1558_v1 }
 0x4a8   : > { %1382 = vmatpush3.bf16.msra.mxu1 (%p521_p11), %v1469_v43 }
 0x4a9   : > { %1383 = vmatprep.subr.bf16.mxu1 (%p521_p11), %v1558_v1 }
 0x4ac   : > { %1384 = vmatpush3.bf16.msra.mxu1 (%p521_p11), %v1470_v44 }
 0x55f   : > { %523 = sbr.rel (!%p521_p11) target bundleno = 344 (0x158), region = 128 }
 0x562   : >> { %v889_v12 = vpop.f32.mrb[8].mxu1 }
 0x563   : >> { %v895_v13 = vadd.f32 %v1549_v18, %v889_v12   ;;  %v1359_v14 = vpop.f32.mrb[9].mxu1 }
 0x564   : >> { %v892_v15 = vpop.f32.mrb[10].mxu1 }
 0x565   : >> { %v1360_v16 = vpop.f32.mrb[11].mxu1  ;;  %v1902_v18 = vmov %v895_v13  ;;  %v896_v19 = vadd.f32 (%p521_p11), %v895_v13, %v1692_v0  ;;  %v1461_v0 = vld [vmem:[%s1887_s10] sm:$0xff] (%p521_p11)  }
 0x566   : > { %1362 = vmatpush3.bf16.msra.mxu0 %v1461_v0 }
 0x567   : > { %v1774_v21 = vadd.f32 %v1271_v20, %v896_v19  ;;  %1363 = vmatprep.subr.bf16.mxu0 %v1558_v1 }
 0x569   : > { %v907_v18 = vsel %vm489_vm0, %v1774_v21, 0.0 }
 0x56a   : > { %908 = vadd.xlane.f32.xlu0 %v907_v18  ;;  %1364 = vmatpush3.bf16.msra.mxu0 %v1462_v17 }
 0x5f7   : > { %v909_v22 = vpop.xlane.xlu0 %908 }
 0x5f8   : > { %v910_v23 = vmul.f32 0.03125, %v909_v22 }
 0x5fa   : > { %v911_v24 = vsub.f32 %v1774_v21, %v910_v23 }
 0x5fc   : > { %v912_v25 = vmul.f32 %v911_v24, %v911_v24 }
 0x5fe   : > { %v913_v26 = vsel %vm489_vm0, %v912_v25, 0.0 }
 0x5ff   : > { %914 = vadd.xlane.f32.xlu0 %v913_v26 }
 0x68c   : > { %v915_v28 = vpop.xlane.xlu0 %914 }
 0x68d   : > { %v916_v29 = vmul.f32 0.03125, %v915_v28 }
 0x68f   : > { %v917_v30 = vadd.f32 1e-05, %v916_v29 }
 0x691   : > { %1471 = vrsqrt.f32 %v917_v30 }
 0x69b   : > { %v1472_v31 = vpop.eup %1471 }
 0x69c   : > { %v919_v33 = vmul.f32 %v1472_v31, %v911_v24 }
 0x69e   : > { %v926_v35 = vmul.f32 %v1272_v32, %v919_v33 }
 0x6a0   : > { %v933_v36 = vadd.f32 %v1273_v34, %v926_v35 }
 0x6a2   : > { %v934_v37 = vpack.c.bf16 %v933_v36, %v933_v36 }
 0x6a4   : > { %1366 = vmatmul.mubr.msk.bf16.vlgmr.msra.gmra.mrb[0].mxu0 %vm489_vm0, %v934_v37 }
 0x777   : > { %v995_v46 = vpop.f32.mrb[0].mxu0 }
 0x778   : > { %v996_v47 = vadd.f32 %v1274_v45, %v995_v46  ;;  %v1367_v48 = vpop.f32.mrb[1].mxu0 }
 0x779   : > { %v998_v49 = vpop.f32.mrb[2].mxu0 }
 0x77a   : > { %v1002_v50 = vmul.f32 0.044715, %v996_v47  ;;  %v1368_v51 = vpop.f32.mrb[3].mxu0  ;;  %v1001_v57 = vmul.f32 0.5, %v996_v47 }
 0x77c   : > { %v1003_v52 = vmul.f32 %v1002_v50, %v996_v47 }
 0x77e   : > { %v1004_v53 = vmul.f32 %v1003_v52, %v996_v47 }
 0x780   : > { %v1005_v54 = vadd.f32 %v1004_v53, %v996_v47 }
 0x782   : > { %v1006_v55 = vmul.f32 0.7978846, %v1005_v54 }
 0x784   : > { %1473 = vtanh.f32 %v1006_v55 }
 0x78e   : > { %v1474_v56 = vpop.eup %1473 }
 0x78f   : > { %v1008_v58 = vadd.f32 1.0, %v1474_v56 }
 0x791   : > { %v1009_v59 = vmul.f32 %v1008_v58, %v1001_v57 }
 0x793   : > { %v1010_v60 = vpack.c.bf16 %v1009_v59, %v1009_v59 }
 0x795   : > { %1386 = vmatmul.mubr.bf16.vlgmr.msra.gmra.mrb[0].mxu1 %v1010_v60 }
 0x868   : > { %v1116_v62 = vpop.f32.mrb[0].mxu1 }
 0x869   : > { %v1117_v63 = vadd.f32 %v1278_v61, %v1116_v62  ;;  %v1387_v2 = vpop.f32.mrb[1].mxu1 }
 0x86a   : > { %v1119_v3 = vpop.f32.mrb[2].mxu1 }
 0x86b   : > { %v1122_v4 = vadd.f32 %v1117_v63, %v1774_v21  ;;  %v1388_v5 = vpop.f32.mrb[3].mxu1 }
 0x86d   : > { %1123 = vst.msk [vmem:[%s1904_s15] sm:$0xff] %vm489_vm0, %v1122_v4 }
 0x86e   : > { %1488 = shalt.err (!%p1485_p4)
}
 0x86f   : > { %s1489_s25 = scalar_lea.hbm %s1830_s21, 128  ;;  %s1493_s0 = scalar_lea.hbm %s1891_s14, 256 }
 0x870   : > { %p1490_p7 = scmp.ne.s32.totalorder %s1830_s21, %s1489_s25  ;;  %p1494_p10 = scmp.lt.u32.totalorder %s1830_s21, %s1891_s14 }
 0x871   : > { %p1495_p11 = scmp.lt.u32.totalorder %s1493_s0, %s1489_s25  ;;  %p1497_p13 = scmp.lt.u32.totalorder %s1489_s25, %s1830_s21 }
 0x872   : > { %p1491_p8 = pnand %p1490_p7, %p1674_p5 }
 0x873   : > { %p1496_p12 = por %p1495_p11, %p1494_p10 }
 0x874   : > { %p1492_p9 = pneg %p1491_p8 }
 0x875   : > { %p1498_p0 = por %p1497_p13, %p1496_p12 }
 0x877   : > { %p1499_p1 = pnand %p1498_p0, %p1492_p9 }
 0x879   : > { %1502 = shalt.err (!%p1499_p1)
}
 0x87a   : > { %1389 = dma.vmem_to_hbm [thread:$0]  (%p1674_p5), %s1832_s20, 128, %s1830_s21, %s1125_s26  }
 0x87b PF: > { %p1395_p2 = scmp.ge.s32.totalorder %s1545_s16, 2  ;;  %s1150_s17 = sand.u32 1, %s1533_s29  }
 0x87c   : > { %s1151_s18 = scalar_lea.sflag [#allocation3], %s1150_s17 }
 0x87d   : > { %p1392_p3 = pnand %p1395_p2, %p1678_p6 }
 0x87f   : > { %1528 = dma.done.wait (!%p1392_p3), %s1151_s18, 128  }
 0x880   : > { %1530 = vsyncadd (!%p1392_p3), %s1151_s18, 4294967168  ;;  %s1906_s22 = sld [smem:[#allocation5_spill]]  ;;  %s1907_s15 = sld [smem:[#allocation6_spill]] }
 0x881   : > { %p24_p4 = scmp.ge.s32.totalorder %s1661_s19, 4   ;;  %s1908_s29 = smov %s1537_s30 }
 0x882   : > { %s1910_s16 = smov %s1661_s19 }
 0x883   :  { %26 = sbr.rel (!%p24_p4) target bundleno = 6 (0x6), region = 139 }
 0x886   : > { %s1909_s30 = smov %s1906_s22 }
 0x88a   :  { %1156 = vsyncpa [#allocation3], 1 }
 0x88b   :  { %1158 = vsyncpa [#allocation3 + $0x1], 1 }

</bundles_post_ra>
